<compile_context>
chip_gen: v7x
topology: tpu7x:2x2x1
jax: 0.10.0
libtpu: 0.0.40
codegen_flags: <defaults>
</compile_context>

<pallas_src>
import numpy as np
import jax
import jax.numpy as jnp
from jax.experimental import pallas as pl
from jax.experimental.pallas import tpu as pltpu


def _cdiv(a, b):
    return (a + b - 1) // b


def _round_up(n, m):
    return _cdiv(n, m) * m


def decoder_kernel(x_ref, w1t_ref, b1_ref, w2t_ref, b2_ref, o_ref):
    # One batch tile: y = relu(x @ W1^T + b1) @ W2^T + b2
    #   x_ref  : (TB, 6)      natural layout tile of x (batch on sublanes)
    #   w1t_ref: (6, 9)       W1^T  (tiny, resident across the whole grid)
    #   b1_ref : (1, 9)
    #   w2t_ref: (9, Dout)    W2^T  (tiny, resident)
    #   b2_ref : (1, Dout)
    #   o_ref  : (TB, Dout)
    x = x_ref[...]
    h = jnp.dot(x, w1t_ref[...], preferred_element_type=jnp.float32) + b1_ref[...]
    h = jnp.maximum(h, 0.0)                                  # ReLU (layer 1 only)
    y = jnp.dot(h, w2t_ref[...], preferred_element_type=jnp.float32) + b2_ref[...]
    o_ref[...] = y.astype(o_ref.dtype)                       # no final activation


def _pick_tile_b(B, max_tile_b):
    """Batch tile heuristic.

    Big tiles amortize the ~0.35 us per-grid-step pipeline overhead (32K rows
    already sits near HBM roofline on v5e/v6e), but when the batch allows it we
    keep at least 2 grid steps so the 'parallel' axis shards across both v7x
    TensorCores.  Tile must be a multiple of 8 (sublane axis); we use 128.
    """
    B128 = _round_up(B, 128)
    if B128 <= 128:
        return 128
    n_steps = max(2, _cdiv(B128, max_tile_b))
    return _round_up(_cdiv(B128, n_steps), 128)


def decoder_forward(x, w1, b1, w2, b2, *, tile_b=None, max_tile_b=32768,
                    out_dtype=None):
    """Decoder forward pass.

    x : (B, 6)                          (natural PyTorch layout)
    w1: (9, 6),  b1: (9,)               (PyTorch nn.Linear layout)
    w2: (Dout, 9), b2: (Dout,)
    returns (B, Dout), dtype out_dtype (default: x.dtype)
    """
    B, D_in = x.shape
    H = w1.shape[0]          # 9
    D_out = w2.shape[0]
    assert w1.shape == (H, D_in) and w2.shape == (D_out, H)
    assert b1.shape == (H,) and b2.shape == (D_out,)
    out_dtype = x.dtype if out_dtype is None else out_dtype

    if tile_b is None:
        tile_b = _pick_tile_b(B, max_tile_b)
    assert tile_b % 8 == 0, "batch tile sits on the sublane axis; needs % 8 == 0"
    grid_b = _cdiv(B, tile_b)   # ragged last block handled by Pallas (OOB rows dropped)

    # Tiny weight transposes (<= Dout*9 elements) -- negligible vs. activation traffic.
    w1t = w1.T.astype(jnp.float32)                 # (6, 9)
    w2t = w2.T.astype(jnp.float32)                 # (9, Dout)
    b1r = b1.reshape(1, H).astype(jnp.float32)
    b2r = b2.reshape(1, D_out).astype(jnp.float32)

    # VMEM estimate: double-buffered x/out tiles + live intermediates.  Only
    # raise the scoped limit above the 16/32 MiB defaults when tiles need it.
    out_itemsize = np.dtype(out_dtype).itemsize
    est = (2 * tile_b * (D_in * 4 + D_out * out_itemsize)   # double-buffered in/out blocks
           + tile_b * (H + D_out) * 4                       # h / y live f32 values
           + (1 << 16))                                     # weights, biases, slack
    vmem_limit = min(max(32 << 20, int(est * 1.25) + (4 << 20)), 128 << 20)

    flops = 2 * B * (D_in * H + H * D_out)
    bytes_accessed = (B * (D_in * 4 + D_out * out_itemsize)
                      + (D_in * H + H + H * D_out + D_out) * 4)

    return pl.pallas_call(
        decoder_kernel,
        out_shape=jax.ShapeDtypeStruct((B, D_out), out_dtype),
        grid_spec=pltpu.PrefetchScalarGridSpec(
            num_scalar_prefetch=0,
            grid=(grid_b,),
            in_specs=[
                pl.BlockSpec((tile_b, D_in), lambda i: (i, 0)),   # x batch tile
                pl.BlockSpec((D_in, H), lambda i: (0, 0)),        # W1^T (full, tiny)
                pl.BlockSpec((1, H), lambda i: (0, 0)),           # b1
                pl.BlockSpec((H, D_out), lambda i: (0, 0)),       # W2^T (full, tiny)
                pl.BlockSpec((1, D_out), lambda i: (0, 0)),       # b2
            ],
            out_specs=pl.BlockSpec((tile_b, D_out), lambda i: (i, 0)),
        ),
        compiler_params=pltpu.CompilerParams(
            dimension_semantics=("parallel",),   # shards across v7x TCs when grid_b >= 2
            vmem_limit_bytes=vmem_limit,
        ),
        cost_estimate=pl.CostEstimate(
            flops=flops, transcendentals=0, bytes_accessed=bytes_accessed),
    )(x.astype(jnp.float32), w1t, b1r, w2t, b2r)


def init_params(key, output_size):
    """Mimics PyTorch nn.Linear default init: uniform(+-1/sqrt(fan_in))."""
    k1, k2, k3, k4 = jax.random.split(key, 4)
    bound1 = 1.0 / jnp.sqrt(6.0)   # layer1 fan_in = 6
    bound2 = 1.0 / jnp.sqrt(9.0)   # layer2 fan_in = 9
    w1 = jax.random.uniform(k1, (9, 6), jnp.float32, -bound1, bound1)
    b1 = jax.random.uniform(k2, (9,), jnp.float32, -bound1, bound1)
    w2 = jax.random.uniform(k3, (output_size, 9), jnp.float32, -bound2, bound2)
    b2 = jax.random.uniform(k4, (output_size,), jnp.float32, -bound2, bound2)
    return w1, b1, w2, b2


if __name__ == "__main__":
    key = jax.random.PRNGKey(0)
    kx, kp = jax.random.split(key)

    batch = 200          # ragged on purpose: grid=(2,), last block clipped in-kernel
    output_size = 16     # the Decoder's `output_size`
    x = jax.random.normal(kx, (batch, 6), jnp.float32)
    w1, b1, w2, b2 = init_params(kp, output_size)

    out = decoder_forward(x, w1, b1, w2, b2)   # heuristic picks tile_b=128, grid=(2,)
    out = jax.block_until_ready(out)

    # Pure-JAX reference (PyTorch semantics: x @ W.T + b, ReLU after layer1 only)
    ref = jnp.maximum(x @ w1.T + b1, 0.0) @ w2.T + b2
    assert out.shape == (batch, output_size)
    assert out.dtype == jnp.float32
    assert jnp.allclose(out, ref, atol=1e-4, rtol=1e-4), float(jnp.max(jnp.abs(out - ref)))

    print("KERNEL_OK")
</pallas_src>

<mosaic_0001>
module attributes {stable_mosaic.version = 11 : i64} {
  func.func @decoder_kernel(%arg0: i32, %arg1: memref<128x6xf32, #tpu.memory_space<vmem>>, %arg2: memref<6x9xf32, #tpu.memory_space<vmem>>, %arg3: memref<1x9xf32, #tpu.memory_space<vmem>>, %arg4: memref<9x16xf32, #tpu.memory_space<vmem>>, %arg5: memref<1x16xf32, #tpu.memory_space<vmem>>, %arg6: memref<128x16xf32, #tpu.memory_space<vmem>>) attributes {dimension_semantics = [#tpu.dimension_semantics<parallel>], iteration_bounds = array<i64: 2>, scalar_prefetch = 0 : i64, scratch_operands = 0 : i64, tpu.core_type = #tpu.core_type<tc>, window_params = [{transform_indices = @transform_0, window_bounds = array<i64: 128, 6>}, {pipeline_mode = #tpu.pipeline_mode<synchronous>, transform_indices = @transform_1, window_bounds = array<i64: 6, 9>}, {pipeline_mode = #tpu.pipeline_mode<synchronous>, transform_indices = @transform_2, window_bounds = array<i64: 1, 9>}, {pipeline_mode = #tpu.pipeline_mode<synchronous>, transform_indices = @transform_3, window_bounds = array<i64: 9, 16>}, {pipeline_mode = #tpu.pipeline_mode<synchronous>, transform_indices = @transform_4, window_bounds = array<i64: 1, 16>}, {transform_indices = @transform_5, window_bounds = array<i64: 128, 16>}]} {
    %c0 = arith.constant 0 : index
    %c0_0 = arith.constant 0 : index
    %0 = vector.load %arg1[%c0, %c0_0] : memref<128x6xf32, #tpu.memory_space<vmem>>, vector<128x6xf32>
    %c0_1 = arith.constant 0 : index
    %c0_2 = arith.constant 0 : index
    %1 = vector.load %arg2[%c0_1, %c0_2] : memref<6x9xf32, #tpu.memory_space<vmem>>, vector<6x9xf32>
    %cst = arith.constant dense<0.000000e+00> : vector<128x9xf32>
    %2 = tpu.matmul %0, %1, %cst {dimension_numbers = #tpu.dot_dimension_numbers<[1], [0], [0], [1], [0, 0, 1, 1], [], []>} : vector<128x6xf32>, vector<6x9xf32>, vector<128x9xf32> -> vector<128x9xf32>
    %c0_3 = arith.constant 0 : index
    %c0_4 = arith.constant 0 : index
    %3 = vector.load %arg3[%c0_3, %c0_4] : memref<1x9xf32, #tpu.memory_space<vmem>>, vector<1x9xf32>
    %4 = vector.broadcast %3 : vector<1x9xf32> to vector<128x9xf32>
    %5 = arith.addf %2, %4 : vector<128x9xf32>
    %cst_5 = arith.constant 0.000000e+00 : f32
    %6 = vector.broadcast %cst_5 : f32 to vector<128x9xf32>
    %7 = arith.maximumf %5, %6 : vector<128x9xf32>
    %c0_6 = arith.constant 0 : index
    %c0_7 = arith.constant 0 : index
    %8 = vector.load %arg4[%c0_6, %c0_7] : memref<9x16xf32, #tpu.memory_space<vmem>>, vector<9x16xf32>
    %cst_8 = arith.constant dense<0.000000e+00> : vector<128x16xf32>
    %9 = tpu.matmul %7, %8, %cst_8 {dimension_numbers = #tpu.dot_dimension_numbers<[1], [0], [0], [1], [0, 0, 1, 1], [], []>} : vector<128x9xf32>, vector<9x16xf32>, vector<128x16xf32> -> vector<128x16xf32>
    %c0_9 = arith.constant 0 : index
    %c0_10 = arith.constant 0 : index
    %10 = vector.load %arg5[%c0_9, %c0_10] : memref<1x16xf32, #tpu.memory_space<vmem>>, vector<1x16xf32>
    %11 = vector.broadcast %10 : vector<1x16xf32> to vector<128x16xf32>
    %12 = arith.addf %9, %11 : vector<128x16xf32>
    %c0_11 = arith.constant 0 : index
    %c0_12 = arith.constant 0 : index
    %13 = vector.load %arg6[%c0_11, %c0_12] : memref<128x16xf32, #tpu.memory_space<vmem>>, vector<128x16xf32>
    tpu.vector_store %arg6[%c0_11, %c0_12], %12 {strides = array<i32>} : memref<128x16xf32, #tpu.memory_space<vmem>>, vector<128x16xf32>,
    return
  }
  func.func @transform_0(%arg0: i32) -> (i32, i32) {
    %c0_i32 = arith.constant 0 : i32
    %c0_i32_0 = arith.constant 0 : i32
    return %arg0, %c0_i32 : i32, i32
  }
  func.func @transform_1(%arg0: i32) -> (i32, i32) {
    %c0_i32 = arith.constant 0 : i32
    %c0_i32_0 = arith.constant 0 : i32
    %c0_i32_1 = arith.constant 0 : i32
    return %c0_i32, %c0_i32_0 : i32, i32
  }
  func.func @transform_2(%arg0: i32) -> (i32, i32) {
    %c0_i32 = arith.constant 0 : i32
    %c0_i32_0 = arith.constant 0 : i32
    %c0_i32_1 = arith.constant 0 : i32
    return %c0_i32, %c0_i32_0 : i32, i32
  }
  func.func @transform_3(%arg0: i32) -> (i32, i32) {
    %c0_i32 = arith.constant 0 : i32
    %c0_i32_0 = arith.constant 0 : i32
    %c0_i32_1 = arith.constant 0 : i32
    return %c0_i32, %c0_i32_0 : i32, i32
  }
  func.func @transform_4(%arg0: i32) -> (i32, i32) {
    %c0_i32 = arith.constant 0 : i32
    %c0_i32_0 = arith.constant 0 : i32
    %c0_i32_1 = arith.constant 0 : i32
    return %c0_i32, %c0_i32_0 : i32, i32
  }
  func.func @transform_5(%arg0: i32) -> (i32, i32) {
    %c0_i32 = arith.constant 0 : i32
    %c0_i32_0 = arith.constant 0 : i32
    return %arg0, %c0_i32 : i32, i32
  }
}

</mosaic_0001>

<bundles_post_ra>
// kernel: tpu_custom_call.1
= control target key start
LH: loop header
LB: loop body
LE: loop exit
PB: predicated region body
PF: predicated region fallthrough
CT: control target
= control target key end

     0   :  { %s1349_s18 = smov 0   ;;  %s1351_s19 = smov 0   ;;  %s1586_s0 = inlined_call_operand.vmem [shape: f32[200,6], index: 0, kind: input, shape index: {}]   ;;  %s1587_s1 = inlined_call_operand.vmem [shape: f32[6,9], index: 1, kind: input, shape index: {}]   ;;  %s1588_s2 = inlined_call_operand.vmem [shape: f32[1,9], index: 2, kind: input, shape index: {}]   ;;  %s1589_s3 = inlined_call_operand.vmem [shape: f32[9,16], index: 3, kind: input, shape index: {}]   ;;  %s1590_s4 = inlined_call_operand.vmem [shape: f32[1,16], index: 4, kind: input, shape index: {}]   ;;  %s1591_s5 = inlined_call_operand.vmem [shape: f32[200,16], index: 5, kind: output, shape index: {}]  }
   0x1   :  { %s1353_s20 = smov 0  }
   0x2 LB: > { %s1362_s21 = sadd.s32 4294967295, %s1284_s20   ;;  %s1364_s22 = sadd.s32 1, %s1284_s20   ;;  %s1284_s20 = sphi %s1353_s20, %s1598_s20   ;;  %s1280_s19 = sphi %s1351_s19, %s1597_s19   ;;  %s1276_s18 = sphi %s1349_s18, %s1596_s18  }
   0x3   : > { %s129_s23 = ssub.s32 %s1284_s20, %s1364_s22  ;;  %s132_s24 = sadd.s32 1, %s1280_s19 }
   0x4   : > { %p130_p0 = scmp.eq.s32.totalorder %s129_s23, 0  ;;  %p142_p1 = scmp.ne.s32.totalorder %s1280_s19, %s1276_s18 }
   0x5   : > { %p143_p2 = scmp.eq.s32.totalorder %s1362_s21, 1  ;;  %p986_p3 = scmp.ge.s32.totalorder %s1284_s20, 1 }
   0x6   : > { %s1372_s25 = scalar_select %p130_p0, %s1280_s19, %s132_s24  }
   0x7   : > { %p1374_p4 = por %p143_p2, %p142_p1  ;;  %p196_p5 = scmp.lt.s32.totalorder %s1284_s20, 3 }
   0x9   : > { %p197_p6 = pnand %p986_p3, %p196_p5 }
   0xa   : > { %v262_v0 = vld [vmem:[%s1587_s1] sm:$0x3f] (!%p197_p6)  ;;  %vm319_vm0 = vcmask (!%p197_p6), 1045504   ;;  %s1382_s29 = sshll.u32 (!%p197_p6), %s1362_s21, 4  ;;  %vm270_vm1 = vcmask (!%p197_p6), 48128   ;;  %vm542_vm2 = vcmask (!%p197_p6), 1040384  }
   0xb   : > { %200 = sbr.rel (%p197_p6) target bundleno = 535 (0x217), region = 40  ;;  %1081 = vmatprep.subr.msk.mxu0 (!%p197_p6), %vm319_vm0, %v262_v0  ;;  %p232_p7 = scmp.lt.s32.totalorder (!%p197_p6), %s1382_s29, 24  ;;  %v484_v17 = vld [vmem:[%s1589_s3] sm:$0xff] (!%p197_p6)  ;;  %v485_v18 = vld [vmem:[%s1589_s3 + $0x8] sm:$0x1] (!%p197_p6)  ;;  %vm1318_vm3 = vmmov (!%p197_p6), 1  }
   0xc   : > { %1082 = vmatpush3.msk.msra.mxu0 (!%p197_p6), %vm319_vm0, %v262_v0  ;;  %v1135_v19 = vpack.c.bf16 (!%p197_p6), %v485_v18, %v484_v17  ;;  %vm1136_vm4 = vmpackc.low (!%p197_p6), %vm542_vm2, %vm1318_vm3  ;;  %v990_v20 = vld [vmem:[%s1588_s2] ss:$0 sm:$0xff] (!%p197_p6)  ;;  %vm493_vm5 = vcmask (!%p197_p6), 72704   ;;  %s224_s16 = sand.u32 (!%p197_p6), 1, %s1276_s18   ;;  %vm691_vm6 = vcmask (!%p197_p6), 130048  }
   0xd   : > { %s987_s17 = sshll.u32 (!%p197_p6), %s224_s16, 7 }
   0xe   : > { %1137 = vmatprep.subr.msk.bf16.mxu1 (!%p197_p6), %vm1136_vm4, %v1135_v19  ;;  %s1452_s24 = scalar_lea.vmem (!%p197_p6), [#allocation2], %s987_s17  }
   0xf   : > { %1140 = vmatpush3.bf16.msk.msra.mxu1 (!%p197_p6), %vm1136_vm4, %v1135_v19 }
  0x12   : > { %s233_s30 = scalar_select %p232_p7, %s1382_s29, 24 }
  0x13   : > { %s716_s18 = ssub.s32 (%p1374_p4), 25, %s1382_s29  ;;  %s1043_s27 = sshll.u32 (%p1374_p4), %s1362_s21, 7 }
  0x14   : > { %s989_s6 = sshll.u32 %s233_s30, 3  ;;  %p717_p8 = scmp.lt.s32.totalorder (%p1374_p4), %s716_s18, 16 }
  0x15   : > { %s1389_s9 = scalar_lea.vmem %s1586_s0, %s989_s6  ;;  %s1493_s6 = scalar_lea.vmem (%p1374_p4), %s1591_s5, %s1043_s27  }
  0x16   : > { %v246_v1 = vld [vmem:[%s1389_s9] sm:$0xff]  ;;  %v247_v2 = vld [vmem:[%s1389_s9 + $0x8] sm:$0xff]  ;;  %v248_v3 = vld [vmem:[%s1389_s9 + $0x10] sm:$0xff] }
  0x17   : > { %1083 = vmatprep.mubr.msk.f32.mxu0 %vm270_vm1, %v246_v1  ;;  %v249_v4 = vld [vmem:[%s1389_s9 + $0x18] sm:$0xff]  ;;  %v250_v5 = vld [vmem:[%s1389_s9 + $0x20] sm:$0xff]  ;;  %v251_v6 = vld [vmem:[%s1389_s9 + $0x28] sm:$0xff] }
  0x18   : > { %1084 = vmatmul.mubr.msk.f32.vlgmr.msra.gmra.mrb[0].mxu0 %vm270_vm1, %v247_v2  ;;  %v252_v7 = vld [vmem:[%s1389_s9 + $0x30] sm:$0xff]  ;;  %v253_v8 = vld [vmem:[%s1389_s9 + $0x38] sm:$0xff]  ;;  %v254_v9 = vld [vmem:[%s1389_s9 + $0x40] sm:$0xff] }
  0x19   : > { %1086 = vmatprep.mubr.msk.f32.mxu0 %vm270_vm1, %v248_v3  ;;  %v255_v10 = vld [vmem:[%s1389_s9 + $0x48] sm:$0xff]  ;;  %v256_v11 = vld [vmem:[%s1389_s9 + $0x50] sm:$0xff]  ;;  %v257_v12 = vld [vmem:[%s1389_s9 + $0x58] sm:$0xff] }
  0x1a   : > { %v258_v13 = vld [vmem:[%s1389_s9 + $0x60] sm:$0xff]  ;;  %v259_v14 = vld [vmem:[%s1389_s9 + $0x68] sm:$0xff]  ;;  %v260_v15 = vld [vmem:[%s1389_s9 + $0x70] sm:$0xff] }
  0x1b   : > { %v261_v16 = vld [vmem:[%s1389_s9 + $0x78] sm:$0xff] }
  0x1c   : > { %1087 = vmatmul.mubr.msk.f32.gmra.mrb[2].mxu0 %vm270_vm1, %v249_v4 }
  0x1d   : > { %1089 = vmatprep.mubr.msk.f32.mxu0 %vm270_vm1, %v250_v5  ;;  %v1008_v5 = vld [vmem:[%s1590_s4] ss:$0 sm:$0xff] }
  0x20   : > { %1090 = vmatmul.mubr.msk.f32.gmra.mrb[4].mxu0 %vm270_vm1, %v251_v6 }
  0x21   : > { %1092 = vmatprep.mubr.msk.f32.mxu0 %vm270_vm1, %v252_v7 }
  0x24   : > { %1093 = vmatmul.mubr.msk.f32.gmra.mrb[6].mxu0 %vm270_vm1, %v253_v8 }
  0x25   : > { %1095 = vmatprep.mubr.msk.f32.mxu0 %vm270_vm1, %v254_v9 }
  0x28   : > { %1096 = vmatmul.mubr.msk.f32.gmra.mrb[8].mxu0 %vm270_vm1, %v255_v10 }
  0x29   : > { %1098 = vmatprep.mubr.msk.f32.mxu0 %vm270_vm1, %v256_v11 }
  0x2c   : > { %1099 = vmatmul.mubr.msk.f32.gmra.mrb[10].mxu0 %vm270_vm1, %v257_v12 }
  0x2d   : > { %1101 = vmatprep.mubr.msk.f32.mxu0 %vm270_vm1, %v258_v13 }
  0x30   : > { %1102 = vmatmul.mubr.msk.f32.gmra.mrb[12].mxu0 %vm270_vm1, %v259_v14 }
  0x31   : > { %1104 = vmatprep.mubr.msk.f32.mxu0 %vm270_vm1, %v260_v15 }
  0x34   : > { %1105 = vmatmul.mubr.msk.f32.gmra.mrb[14].mxu0 %vm270_vm1, %v261_v16 }
  0xeb   : > { %v1085_v21 = vpop.f32.mrb[0].mxu0 }
  0xec   : > { %v395_v22 = vadd.f32 %v1085_v21, %v990_v20  ;;  %v389_v23 = vpop.f32.mrb[1].mxu0 }
  0xed   : > { %v390_v24 = vadd.f32 %v990_v20, %v389_v23 }
  0xee   : > { %v469_v27 = vmax.f32 %v395_v22, 0.0 }
  0xef   : > { %v468_v25 = vmax.f32 %v390_v24, 0.0  ;;  %v1088_v26 = vpop.f32.mrb[2].mxu0 }
  0xf0   : > { %v405_v28 = vadd.f32 %v1088_v26, %v990_v20  ;;  %v399_v29 = vpop.f32.mrb[3].mxu0 }
  0xf1   : > { %v400_v30 = vadd.f32 %v990_v20, %v399_v29  ;;  %1111 = vmatprep.mubr.msk.f32.mxu1 %vm493_vm5, %v468_v25 }
  0xf2   : > { %1112 = vmatmul.mubr.msk.f32.vlgmr.msra.gmra.mrb[0].mxu1 %vm493_vm5, %v469_v27  ;;  %v471_v33 = vmax.f32 %v405_v28, 0.0 }
  0xf3   : > { %v470_v31 = vmax.f32 %v400_v30, 0.0  ;;  %v1091_v32 = vpop.f32.mrb[4].mxu0 }
  0xf4   : > { %v415_v34 = vadd.f32 %v1091_v32, %v990_v20  ;;  %v409_v35 = vpop.f32.mrb[5].mxu0 }
  0xf5   : > { %v410_v36 = vadd.f32 %v990_v20, %v409_v35  ;;  %1114 = vmatprep.mubr.msk.f32.mxu1 %vm493_vm5, %v470_v31 }
  0xf6   : > { %1115 = vmatmul.mubr.msk.f32.gmra.mrb[2].mxu1 %vm493_vm5, %v471_v33  ;;  %v473_v39 = vmax.f32 %v415_v34, 0.0 }
  0xf7   : > { %v472_v37 = vmax.f32 %v410_v36, 0.0  ;;  %v1094_v38 = vpop.f32.mrb[6].mxu0 }
  0xf8   : > { %v425_v40 = vadd.f32 %v1094_v38, %v990_v20  ;;  %v419_v41 = vpop.f32.mrb[7].mxu0 }
  0xf9   : > { %v420_v42 = vadd.f32 %v990_v20, %v419_v41  ;;  %1117 = vmatprep.mubr.msk.f32.mxu1 %vm493_vm5, %v472_v37 }
  0xfa   : > { %1118 = vmatmul.mubr.msk.f32.gmra.mrb[4].mxu1 %vm493_vm5, %v473_v39  ;;  %v475_v45 = vmax.f32 %v425_v40, 0.0 }
  0xfb   : > { %v474_v43 = vmax.f32 %v420_v42, 0.0  ;;  %v1097_v44 = vpop.f32.mrb[8].mxu0 }
  0xfc   : > { %v435_v46 = vadd.f32 %v1097_v44, %v990_v20  ;;  %v429_v47 = vpop.f32.mrb[9].mxu0 }
  0xfd   : > { %v430_v48 = vadd.f32 %v990_v20, %v429_v47  ;;  %1120 = vmatprep.mubr.msk.f32.mxu1 %vm493_vm5, %v474_v43 }
  0xfe   : > { %1121 = vmatmul.mubr.msk.f32.gmra.mrb[6].mxu1 %vm493_vm5, %v475_v45  ;;  %v477_v51 = vmax.f32 %v435_v46, 0.0 }
  0xff   : > { %v476_v49 = vmax.f32 %v430_v48, 0.0  ;;  %v1100_v50 = vpop.f32.mrb[10].mxu0 }
 0x100   : > { %v445_v52 = vadd.f32 %v1100_v50, %v990_v20  ;;  %v439_v53 = vpop.f32.mrb[11].mxu0 }
 0x101   : > { %v440_v54 = vadd.f32 %v990_v20, %v439_v53  ;;  %1123 = vmatprep.mubr.msk.f32.mxu1 %vm493_vm5, %v476_v49 }
 0x102   : > { %1124 = vmatmul.mubr.msk.f32.gmra.mrb[8].mxu1 %vm493_vm5, %v477_v51  ;;  %v479_v57 = vmax.f32 %v445_v52, 0.0 }
 0x103   : > { %v478_v55 = vmax.f32 %v440_v54, 0.0  ;;  %v1103_v56 = vpop.f32.mrb[12].mxu0 }
 0x104   : > { %v455_v58 = vadd.f32 %v1103_v56, %v990_v20  ;;  %v449_v59 = vpop.f32.mrb[13].mxu0 }
 0x105   : > { %v450_v60 = vadd.f32 %v990_v20, %v449_v59  ;;  %1126 = vmatprep.mubr.msk.f32.mxu1 %vm493_vm5, %v478_v55 }
 0x106   : > { %1127 = vmatmul.mubr.msk.f32.gmra.mrb[10].mxu1 %vm493_vm5, %v479_v57  ;;  %v481_v63 = vmax.f32 %v455_v58, 0.0 }
 0x107   : > { %v480_v61 = vmax.f32 %v450_v60, 0.0  ;;  %v1106_v62 = vpop.f32.mrb[14].mxu0 }
 0x108   : > { %v465_v0 = vadd.f32 %v1106_v62, %v990_v20  ;;  %v459_v1 = vpop.f32.mrb[15].mxu0 }
 0x109   : > { %v460_v2 = vadd.f32 %v990_v20, %v459_v1  ;;  %1129 = vmatprep.mubr.msk.f32.mxu1 %vm493_vm5, %v480_v61 }
 0x10a   : > { %1130 = vmatmul.mubr.msk.f32.gmra.mrb[12].mxu1 %vm493_vm5, %v481_v63  ;;  %v483_v4 = vmax.f32 %v465_v0, 0.0 }
 0x10b   : > { %v482_v3 = vmax.f32 %v460_v2, 0.0 }
 0x10d   : > { %1132 = vmatprep.mubr.msk.f32.mxu1 %vm493_vm5, %v482_v3 }
 0x10e   : > { %1133 = vmatmul.mubr.msk.f32.gmra.mrb[14].mxu1 %vm493_vm5, %v483_v4 }
 0x1c5   : > { %v1113_v6 = vpop.f32.mrb[0].mxu1 }
 0x1c6   : > { %v618_v7 = vadd.f32 %v1113_v6, %v1008_v5  ;;  %v612_v8 = vpop.f32.mrb[1].mxu1 }
 0x1c7   : > { %v613_v9 = vadd.f32 %v1008_v5, %v612_v8 }
 0x1c8   : > { %693 = vst.msk [vmem:[%s1452_s24 + $0x8] sm:$0xff] %vm691_vm6, %v618_v7 }
 0x1c9   : > { %692 = vst.msk [vmem:[%s1452_s24] sm:$0xff] %vm691_vm6, %v613_v9  ;;  %v1116_v10 = vpop.f32.mrb[2].mxu1 }
 0x1ca   : > { %v628_v11 = vadd.f32 %v1116_v10, %v1008_v5  ;;  %v622_v12 = vpop.f32.mrb[3].mxu1 }
 0x1cb   : > { %v623_v13 = vadd.f32 %v1008_v5, %v622_v12 }
 0x1cc   : > { %695 = vst.msk [vmem:[%s1452_s24 + $0x18] sm:$0xff] %vm691_vm6, %v628_v11 }
 0x1cd   : > { %694 = vst.msk [vmem:[%s1452_s24 + $0x10] sm:$0xff] %vm691_vm6, %v623_v13  ;;  %v1119_v14 = vpop.f32.mrb[4].mxu1 }
 0x1ce   : > { %v638_v15 = vadd.f32 %v1119_v14, %v1008_v5  ;;  %v632_v16 = vpop.f32.mrb[5].mxu1 }
 0x1cf   : > { %v633_v17 = vadd.f32 %v1008_v5, %v632_v16 }
 0x1d0   : > { %697 = vst.msk [vmem:[%s1452_s24 + $0x28] sm:$0xff] %vm691_vm6, %v638_v15 }
 0x1d1   : > { %696 = vst.msk [vmem:[%s1452_s24 + $0x20] sm:$0xff] %vm691_vm6, %v633_v17  ;;  %v1122_v18 = vpop.f32.mrb[6].mxu1 }
 0x1d2   : > { %v648_v19 = vadd.f32 %v1122_v18, %v1008_v5  ;;  %v642_v20 = vpop.f32.mrb[7].mxu1 }
 0x1d3   : > { %v643_v21 = vadd.f32 %v1008_v5, %v642_v20 }
 0x1d4   : > { %699 = vst.msk [vmem:[%s1452_s24 + $0x38] sm:$0xff] %vm691_vm6, %v648_v19 }
 0x1d5   : > { %698 = vst.msk [vmem:[%s1452_s24 + $0x30] sm:$0xff] %vm691_vm6, %v643_v21  ;;  %v1125_v22 = vpop.f32.mrb[8].mxu1 }
 0x1d6   : > { %v658_v23 = vadd.f32 %v1125_v22, %v1008_v5  ;;  %v652_v24 = vpop.f32.mrb[9].mxu1 }
 0x1d7   : > { %v653_v25 = vadd.f32 %v1008_v5, %v652_v24 }
 0x1d8   : > { %701 = vst.msk [vmem:[%s1452_s24 + $0x48] sm:$0xff] %vm691_vm6, %v658_v23 }
 0x1d9   : > { %700 = vst.msk [vmem:[%s1452_s24 + $0x40] sm:$0xff] %vm691_vm6, %v653_v25  ;;  %v1128_v26 = vpop.f32.mrb[10].mxu1 }
 0x1da   : > { %v668_v27 = vadd.f32 %v1128_v26, %v1008_v5  ;;  %v662_v28 = vpop.f32.mrb[11].mxu1 }
 0x1db   : > { %v663_v29 = vadd.f32 %v1008_v5, %v662_v28 }
 0x1dc   : > { %703 = vst.msk [vmem:[%s1452_s24 + $0x58] sm:$0xff] %vm691_vm6, %v668_v27 }
 0x1dd   : > { %702 = vst.msk [vmem:[%s1452_s24 + $0x50] sm:$0xff] %vm691_vm6, %v663_v29  ;;  %v1131_v30 = vpop.f32.mrb[12].mxu1 }
 0x1de   : > { %v678_v31 = vadd.f32 %v1131_v30, %v1008_v5  ;;  %v672_v32 = vpop.f32.mrb[13].mxu1 }
 0x1df   : > { %v673_v33 = vadd.f32 %v1008_v5, %v672_v32  ;;  %714 = sbr.rel (!%p1374_p4) target bundleno = 535 (0x217), region = 44 }
 0x1e0   : > { %705 = vst.msk [vmem:[%s1452_s24 + $0x68] sm:$0xff] %vm691_vm6, %v678_v31 }
 0x1e1   : > { %704 = vst.msk [vmem:[%s1452_s24 + $0x60] sm:$0xff] %vm691_vm6, %v673_v33  ;;  %v1134_v34 = vpop.f32.mrb[14].mxu1 }
 0x1e2   : > { %v688_v35 = vadd.f32 %v1134_v34, %v1008_v5  ;;  %v682_v36 = vpop.f32.mrb[15].mxu1 }
 0x1e3   : > { %v683_v37 = vadd.f32 %v1008_v5, %v682_v36 }
 0x1e4   : > { %707 = vst.msk [vmem:[%s1452_s24 + $0x78] sm:$0xff] %vm691_vm6, %v688_v35 }
 0x1e5   : > { %706 = vst.msk [vmem:[%s1452_s24 + $0x70] sm:$0xff] %vm691_vm6, %v683_v37 }
 0x1e6   : > { %s1600_s18 = smov (!%p717_p8, %s716_s18), 16 }
 0x1e7   : > { %s1028_s7 = sshll.u32 %s1600_s18, 7 }
 0x1e8   : > { %p1031_p9 = scmp.eq.s32.totalorder %s1028_s7, 0 }
 0x1e9   : > { %s1499_s8 = sshrl.u32 (!%p1031_p9), %s1600_s18, 4 }
 0x1ea   : > { %725 = sbr.rel (%p1031_p9) target bundleno = 535 (0x217), region = 48  ;;  %p1032_p10 = scmp.le.s32.totalorder (!%p1031_p9), %s1499_s8, 0 }
 0x1f1   : > { %939 = sbr.rel (%p1032_p10) target bundleno = 514 (0x202), region = 124  ;;  %s1593_s21 = smov (!%p1032_p10), %s1493_s6 }
 0x1f2   : > { %s1594_s26 = smov (!%p1032_p10), %s1452_s24  ;;  %s1508_s29 = smov (!%p1032_p10), 0  }
 0x1f3   : > { %s1510_s9 = smov (!%p1032_p10), 0  }
 0x1f8 LB: >> { %v817_v38 = vld [vmem:[%s1292_s26] sm:$0xff]  ;;  %v819_v39 = vld [vmem:[%s1292_s26 + $0x8] sm:$0xff]  ;;  %v821_v40 = vld [vmem:[%s1292_s26 + $0x10] sm:$0xff]  ;;  %s849_s10 = sadd.s32 1, %s1296_s29  ;;  %s811_s9 = sadd.s32 1, %s1300_s9   ;;  %s1300_s9 = sphi %s1510_s9, %s811_s9   ;;  %s1296_s29 = sphi %s1508_s29, %s1595_s29   ;;  %s1292_s26 = sphi %s1594_s26, %s854_s26   ;;  %s1288_s21 = sphi %s1593_s21, %s855_s21  }
 0x1f9   : >> { %818 = vst [vmem:[%s1288_s21] sm:$0xff] %v817_v38  ;;  %820 = vst [vmem:[%s1288_s21 + $0x8] sm:$0xff] %v819_v39  ;;  %v823_v41 = vld [vmem:[%s1292_s26 + $0x18] sm:$0xff]  ;;  %v825_v42 = vld [vmem:[%s1292_s26 + $0x20] sm:$0xff]  ;;  %p850_p11 = scmp.ge.s32.totalorder %s849_s10, %s1499_s8  ;;  %p810_p12 = scmp.ge.s32.totalorder %s811_s9, %s1499_s8 }
 0x1fa   : >> { %822 = vst [vmem:[%s1288_s21 + $0x10] sm:$0xff] %v821_v40  ;;  %v827_v43 = vld [vmem:[%s1292_s26 + $0x28] sm:$0xff]  ;;  %824 = vst [vmem:[%s1288_s21 + $0x18] sm:$0xff] %v823_v41  ;;  %v829_v44 = vld [vmem:[%s1292_s26 + $0x30] sm:$0xff] }
 0x1fb   : >> { %826 = vst [vmem:[%s1288_s21 + $0x20] sm:$0xff] %v825_v42  ;;  %828 = vst [vmem:[%s1288_s21 + $0x28] sm:$0xff] %v827_v43  ;;  %v831_v45 = vld [vmem:[%s1292_s26 + $0x38] sm:$0xff]  ;;  %v833_v46 = vld [vmem:[%s1292_s26 + $0x40] sm:$0xff]  ;;  %s1602_s10 = smov (%p850_p11, %s849_s10), 0  ;;  %813 = sbr.rel (!%p810_p12) target bundleno = 504 (0x1f8), region = 130 }
 0x1fc   : >> { %830 = vst [vmem:[%s1288_s21 + $0x30] sm:$0xff] %v829_v44  ;;  %832 = vst [vmem:[%s1288_s21 + $0x38] sm:$0xff] %v831_v45  ;;  %v835_v47 = vld [vmem:[%s1292_s26 + $0x48] sm:$0xff]  ;;  %v837_v48 = vld [vmem:[%s1292_s26 + $0x50] sm:$0xff]  ;;  %s1033_s11 = sshll.u32 %s1602_s10, 7  ;;  %s1595_s29 = smov %s1602_s10 }
 0x1fd   : >> { %834 = vst [vmem:[%s1288_s21 + $0x40] sm:$0xff] %v833_v46  ;;  %v839_v49 = vld [vmem:[%s1292_s26 + $0x58] sm:$0xff]  ;;  %836 = vst [vmem:[%s1288_s21 + $0x48] sm:$0xff] %v835_v47  ;;  %v841_v50 = vld [vmem:[%s1292_s26 + $0x60] sm:$0xff] }
 0x1fe   : >> { %838 = vst [vmem:[%s1288_s21 + $0x50] sm:$0xff] %v837_v48  ;;  %840 = vst [vmem:[%s1288_s21 + $0x58] sm:$0xff] %v839_v49  ;;  %v843_v51 = vld [vmem:[%s1292_s26 + $0x68] sm:$0xff]  ;;  %v845_v52 = vld [vmem:[%s1292_s26 + $0x70] sm:$0xff] }
 0x1ff   : >> { %842 = vst [vmem:[%s1288_s21 + $0x60] sm:$0xff] %v841_v50  ;;  %844 = vst [vmem:[%s1288_s21 + $0x68] sm:$0xff] %v843_v51  ;;  %v847_v53 = vld [vmem:[%s1292_s26 + $0x78] sm:$0xff]  ;;  %s854_s26 = scalar_lea.vmem %s1452_s24, %s1033_s11 [#allocation2]  }
 0x200   : >> { %846 = vst [vmem:[%s1288_s21 + $0x70] sm:$0xff] %v845_v52  ;;  %848 = vst [vmem:[%s1288_s21 + $0x78] sm:$0xff] %v847_v53  ;;  %s855_s21 = scalar_lea.vmem %s1493_s6, %s1033_s11  }
 0x202 PF: > { %s1568_s12 = sand.u32 15, %s1600_s18   ;;  %s1044_s13 = sshll.u32 %s1499_s8, 7 }
 0x203   : > { %s860_s14 = scalar_lea.vmem %s1452_s24, %s1044_s13 [#allocation2]   ;;  %s862_s15 = scalar_lea.vmem %s1493_s6, %s1044_s13  }
 0x204   : > { %p1038_p13 = scmp.le.s32.totalorder %s1568_s12, 0 }
 0x205   : > { %s1302_s16 = smov (!%p1038_p13), %s862_s15   ;;  %s1306_s17 = smov (!%p1038_p13), %s860_s14  }
 0x206   : > { %953 = sbr.rel (%p1038_p13) target bundleno = 535 (0x217), region = 135  ;;  %s1310_s20 = smov (!%p1038_p13), 0  }
 0x207   : > { %s1314_s23 = smov (!%p1038_p13), 0  }
 0x20d LB: >> { %v872_v54 = vld [vmem:[%s1308_s17] sm:$0xff]  ;;  %s874_s18 = sadd.s32 1, %s1312_s20  ;;  %s866_s23 = sadd.s32 1, %s1316_s23   ;;  %s1316_s23 = sphi %s1314_s23, %s866_s23   ;;  %s1312_s20 = sphi %s1310_s20, %s1311_s20   ;;  %s1308_s17 = sphi %s1306_s17, %s879_s17   ;;  %s1304_s16 = sphi %s1302_s16, %s880_s16  }
 0x20e   : >> { %873 = vst [vmem:[%s1304_s16] sm:$0xff] %v872_v54  ;;  %p875_p0 = scmp.ge.s32.totalorder %s874_s18, %s1568_s12  ;;  %p865_p1 = scmp.ge.s32.totalorder %s866_s23, %s1568_s12 }
 0x210   : >> { %s1604_s18 = smov (%p875_p0, %s874_s18), 0  ;;  %868 = sbr.rel (!%p865_p1) target bundleno = 525 (0x20d), region = 141 }
 0x211   : >> { %s1039_s24 = sshll.u32 %s1604_s18, 3  ;;  %s1311_s20 = smov %s1604_s18  }
 0x212   : >> { %s879_s17 = scalar_lea.vmem %s860_s14, %s1039_s24 [#allocation2]   ;;  %s880_s16 = scalar_lea.vmem %s862_s15, %s1039_s24  }
 0x217 PF: > { %p12_p2 = scmp.ge.s32.totalorder %s1364_s22, 4   ;;  %s1596_s18 = smov %s1280_s19 }
 0x218   : > { %s1597_s19 = smov %s1372_s25  ;;  %s1598_s20 = smov %s1364_s22 }
 0x219   :  { %14 = sbr.rel (!%p12_p2) target bundleno = 2 (0x2), region = 152 }

</bundles_post_ra>
